<compile_context>
chip_gen: v6e
topology: v6e:2x2x1
jax: 0.10.0
libtpu: 0.0.40
codegen_flags: <defaults>
</compile_context>

<pallas_src>
import jax
import jax.numpy as jnp
import numpy as np
from jax.experimental import pallas as pl
from jax.experimental.pallas import tpu as pltpu


def sa_block_kernel(xq_ref, xk_ref, m_ref, u_ref, wv_ref, bv_ref, gamma_ref,
                    o_ref):
    # xq_ref : (1, C, TQ)  query slice of x (f32)
    # xk_ref : (1, C, N)   full spatial extent of x for keys/values (f32)
    # m_ref  : (C, C)      Wk^T Wq, bf16 (folded q/k projection)
    # u_ref  : (C, 1)      Wk^T bq, f32
    # wv_ref : (C, C)      value projection weight, bf16
    # bv_ref : (C, 1)      value bias, f32
    # gamma_ref : (1, 1)   SMEM scalar
    xq = xq_ref[0]                                    # (C, TQ) f32
    xk = xk_ref[0]                                    # (C, N)  f32
    xq_b = xq.astype(jnp.bfloat16)
    xk_b = xk.astype(jnp.bfloat16)

    # Folded query-side projection: Pq = (Wk^T Wq) xq + Wk^T bq   : (C, TQ)
    pq = jnp.dot(m_ref[...], xq_b,
                 preferred_element_type=jnp.float32) + u_ref[...]

    # Transposed scores: s[j, i] = xk[:, j] . Pq[:, i]            : (N, TQ)
    s = jnp.dot(xk.T.astype(jnp.bfloat16), pq.astype(jnp.bfloat16),
                preferred_element_type=jnp.float32)

    # Softmax over keys (axis 0); normalisation deferred past the value matmul.
    s_max = jnp.max(s, axis=0, keepdims=True)         # (1, TQ)
    p = jnp.exp(s - s_max)                            # (N, TQ)
    denom = jnp.sum(p, axis=0, keepdims=True)         # (1, TQ)

    # Value projection: v = Wv xk + bv                            : (C, N)
    v = jnp.dot(wv_ref[...], xk_b,
                preferred_element_type=jnp.float32) + bv_ref[...]

    # Unnormalised weighted sum: out_u[c, i] = sum_j v[c, j] p[j, i]
    out_u = jnp.dot(v.astype(jnp.bfloat16), p.astype(jnp.bfloat16),
                    preferred_element_type=jnp.float32)           # (C, TQ)

    inv = pl.reciprocal(denom, approx=True)           # (1, TQ), EUP slot
    o_ref[0] = gamma_ref[0, 0] * (out_u * inv) + xq   # residual in f32


def sa_block_pallas(x_nchw, wq, bq, wk, bk, wv, bv, gamma, *, tq=128):
    """x_nchw: (B, C, H, W).  Conv2d 1x1 params in PyTorch layout:
       wq, wk: (C//8, C); bq, bk: (C//8,); wv: (C, C); bv: (C,); gamma: (1,)."""
    B, C, H, W = x_nchw.shape
    N = H * W
    if N % tq != 0:
        tq = N                       # fall back to a single query tile
    n_qt = N // tq

    x_bcn = x_nchw.reshape(B, C, N)  # native layout: no HBM transpose

    # Fold q/k projections (contraction dim C//8) into one (C, C) operator.
    m_mat = (wk.T @ wq).astype(jnp.bfloat16)                 # (C, C)
    u_vec = (wk.T @ bq).reshape(C, 1).astype(jnp.float32)    # (C, 1)
    wv_b = wv.astype(jnp.bfloat16)                           # (C, C)
    bv_col = bv.reshape(C, 1).astype(jnp.float32)            # (C, 1)
    gamma_2d = jnp.reshape(gamma, (1, 1)).astype(jnp.float32)

    out_bcn = pl.pallas_call(
        sa_block_kernel,
        out_shape=jax.ShapeDtypeStruct((B, C, N), jnp.float32),
        grid_spec=pltpu.PrefetchScalarGridSpec(
            num_scalar_prefetch=0,
            grid=(B, n_qt),
            in_specs=[
                pl.BlockSpec((1, C, tq), lambda b, q: (b, 0, q)),   # x (query tile)
                pl.BlockSpec((1, C, N), lambda b, q: (b, 0, 0)),    # x (keys/values)
                pl.BlockSpec((C, C), lambda b, q: (0, 0)),          # Wk^T Wq (bf16)
                pl.BlockSpec((C, 1), lambda b, q: (0, 0)),          # Wk^T bq
                pl.BlockSpec((C, C), lambda b, q: (0, 0)),          # Wv (bf16)
                pl.BlockSpec((C, 1), lambda b, q: (0, 0)),          # bv
                pl.BlockSpec(memory_space=pltpu.MemorySpace.SMEM),  # gamma scalar
            ],
            out_specs=pl.BlockSpec((1, C, tq), lambda b, q: (b, 0, q)),
        ),
        compiler_params=pltpu.CompilerParams(
            dimension_semantics=("parallel", "parallel"),
            vmem_limit_bytes=32 * 1024 * 1024),
    )(x_bcn, x_bcn, m_mat, u_vec, wv_b, bv_col, gamma_2d)

    return out_bcn.reshape(B, C, H, W)


def sa_block_reference(x_nchw, wq, bq, wk, bk, wv, bv, gamma):
    """Pure-JAX f32 reference reproducing the PyTorch forward exactly."""
    B, C, H, W = x_nchw.shape
    N = H * W
    x_flat = x_nchw.reshape(B, C, N)                          # (B, C, N)
    q = jnp.einsum('oc,bcn->bon', wq, x_flat) + bq.reshape(1, -1, 1)  # (B, C8, N)
    k = jnp.einsum('oc,bcn->bon', wk, x_flat) + bk.reshape(1, -1, 1)  # (B, C8, N)
    v = jnp.einsum('oc,bcn->bon', wv, x_flat) + bv.reshape(1, -1, 1)  # (B, C, N)
    energy = jnp.einsum('bci,bcj->bij', q, k)                 # (B, N, N)
    att = jax.nn.softmax(energy, axis=-1)
    out = jnp.einsum('bcj,bij->bci', v, att)                  # (B, C, N)
    return gamma * out.reshape(B, C, H, W) + x_nchw


if __name__ == "__main__":
    B, C, H, W = 2, 32, 16, 16       # in_dim = 32 -> C//8 = 4, N = 256
    C8 = C // 8

    key = jax.random.PRNGKey(0)
    kx, kq, kbq, kk, kbk, kv, kbv = jax.random.split(key, 7)

    x = jax.random.normal(kx, (B, C, H, W), dtype=jnp.float32)

    # Conv2d 1x1 parameters in PyTorch (out, in) layout.
    wq = 0.1 * jax.random.normal(kq, (C8, C), dtype=jnp.float32)
    bq = 0.1 * jax.random.normal(kbq, (C8,), dtype=jnp.float32)
    wk = 0.1 * jax.random.normal(kk, (C8, C), dtype=jnp.float32)
    bk = 0.1 * jax.random.normal(kbk, (C8,), dtype=jnp.float32)
    wv = 0.1 * jax.random.normal(kv, (C, C), dtype=jnp.float32)
    bv = 0.1 * jax.random.normal(kbv, (C,), dtype=jnp.float32)
    gamma = jnp.ones((1,), dtype=jnp.float32)   # nn.Parameter(torch.ones(1))

    out = sa_block_pallas(x, wq, bq, wk, bk, wv, bv, gamma)
    out = jax.block_until_ready(out)

    ref = sa_block_reference(x, wq, bq, wk, bk, wv, bv, gamma)
    # bf16 MXU operands + approx reciprocal => relaxed tolerance vs f32 ref.
    np.testing.assert_allclose(np.asarray(out), np.asarray(ref),
                               rtol=2e-2, atol=2e-2)

    print("KERNEL_OK")
</pallas_src>

<mosaic_0001>
module attributes {stable_mosaic.version = 11 : i64} {
  func.func @sa_block_kernel(%arg0: i32, %arg1: i32, %arg2: memref<1x32x128xf32, #tpu.memory_space<vmem>>, %arg3: memref<1x32x256xf32, #tpu.memory_space<vmem>>, %arg4: memref<32x32xbf16, #tpu.memory_space<vmem>>, %arg5: memref<32x1xf32, #tpu.memory_space<vmem>>, %arg6: memref<32x32xbf16, #tpu.memory_space<vmem>>, %arg7: memref<32x1xf32, #tpu.memory_space<vmem>>, %arg8: memref<1x1xf32, #tpu.memory_space<smem>>, %arg9: memref<1x32x128xf32, #tpu.memory_space<vmem>>) attributes {dimension_semantics = [#tpu.dimension_semantics<parallel>, #tpu.dimension_semantics<parallel>], iteration_bounds = array<i64: 2, 2>, scalar_prefetch = 0 : i64, scratch_operands = 0 : i64, tpu.core_type = #tpu.core_type<tc>, window_params = [{transform_indices = @transform_0, window_bounds = array<i64: 1, 32, 128>}, {transform_indices = @transform_1, window_bounds = array<i64: 1, 32, 256>}, {pipeline_mode = #tpu.pipeline_mode<synchronous>, transform_indices = @transform_2, window_bounds = array<i64: 32, 32>}, {pipeline_mode = #tpu.pipeline_mode<synchronous>, transform_indices = @transform_3, window_bounds = array<i64: 32, 1>}, {pipeline_mode = #tpu.pipeline_mode<synchronous>, transform_indices = @transform_4, window_bounds = array<i64: 32, 32>}, {pipeline_mode = #tpu.pipeline_mode<synchronous>, transform_indices = @transform_5, window_bounds = array<i64: 32, 1>}, {transform_indices = @transform_6, window_bounds = array<i64: 1, 1>}, {transform_indices = @transform_7, window_bounds = array<i64: 1, 32, 128>}]} {
    %c0 = arith.constant 0 : index
    %c0_0 = arith.constant 0 : index
    %c0_1 = arith.constant 0 : index
    %0 = vector.load %arg2[%c0, %c0_0, %c0_1] : memref<1x32x128xf32, #tpu.memory_space<vmem>>, vector<1x32x128xf32>
    %1 = vector.shape_cast %0 : vector<1x32x128xf32> to vector<32x128xf32>
    %c0_2 = arith.constant 0 : index
    %c0_3 = arith.constant 0 : index
    %c0_4 = arith.constant 0 : index
    %2 = vector.load %arg3[%c0_2, %c0_3, %c0_4] : memref<1x32x256xf32, #tpu.memory_space<vmem>>, vector<1x32x256xf32>
    %3 = vector.shape_cast %2 : vector<1x32x256xf32> to vector<32x256xf32>
    %4 = arith.truncf %1 : vector<32x128xf32> to vector<32x128xbf16>
    %5 = arith.truncf %3 : vector<32x256xf32> to vector<32x256xbf16>
    %c0_5 = arith.constant 0 : index
    %c0_6 = arith.constant 0 : index
    %6 = vector.load %arg4[%c0_5, %c0_6] : memref<32x32xbf16, #tpu.memory_space<vmem>>, vector<32x32xbf16>
    %cst = arith.constant dense<0.000000e+00> : vector<32x128xf32>
    %7 = tpu.matmul %6, %4, %cst {dimension_numbers = #tpu.dot_dimension_numbers<[1], [0], [0], [1], [0, 0, 1, 1], [], []>} : vector<32x32xbf16>, vector<32x128xbf16>, vector<32x128xf32> -> vector<32x128xf32>
    %c0_7 = arith.constant 0 : index
    %c0_8 = arith.constant 0 : index
    %8 = vector.load %arg5[%c0_7, %c0_8] : memref<32x1xf32, #tpu.memory_space<vmem>>, vector<32x1xf32>
    %9 = vector.broadcast %8 : vector<32x1xf32> to vector<32x128xf32>
    %10 = arith.addf %7, %9 : vector<32x128xf32>
    %11 = tpu.transpose %3, [1, 0] : vector<32x256xf32> -> vector<256x32xf32>
    %12 = arith.truncf %11 : vector<256x32xf32> to vector<256x32xbf16>
    %13 = arith.truncf %10 : vector<32x128xf32> to vector<32x128xbf16>
    %cst_9 = arith.constant dense<0.000000e+00> : vector<256x128xf32>
    %14 = tpu.matmul %12, %13, %cst_9 {dimension_numbers = #tpu.dot_dimension_numbers<[1], [0], [0], [1], [0, 0, 1, 1], [], []>} : vector<256x32xbf16>, vector<32x128xbf16>, vector<256x128xf32> -> vector<256x128xf32>
    %cst_10 = arith.constant dense<0xFF800000> : vector<128xf32>
    %15 = vector.multi_reduction <maximumf>, %14, %cst_10 [0] : vector<256x128xf32> to vector<128xf32>
    %16 = vector.shape_cast %15 : vector<128xf32> to vector<1x128xf32>
    %17 = vector.broadcast %16 : vector<1x128xf32> to vector<256x128xf32>
    %18 = arith.subf %14, %17 : vector<256x128xf32>
    %19 = math.exp %18 : vector<256x128xf32>
    %cst_11 = arith.constant dense<0.000000e+00> : vector<128xf32>
    %20 = vector.multi_reduction <add>, %19, %cst_11 [0] : vector<256x128xf32> to vector<128xf32>
    %21 = vector.shape_cast %20 : vector<128xf32> to vector<1x128xf32>
    %c0_12 = arith.constant 0 : index
    %c0_13 = arith.constant 0 : index
    %22 = vector.load %arg6[%c0_12, %c0_13] : memref<32x32xbf16, #tpu.memory_space<vmem>>, vector<32x32xbf16>
    %cst_14 = arith.constant dense<0.000000e+00> : vector<32x256xf32>
    %23 = tpu.matmul %22, %5, %cst_14 {dimension_numbers = #tpu.dot_dimension_numbers<[1], [0], [0], [1], [0, 0, 1, 1], [], []>} : vector<32x32xbf16>, vector<32x256xbf16>, vector<32x256xf32> -> vector<32x256xf32>
    %c0_15 = arith.constant 0 : index
    %c0_16 = arith.constant 0 : index
    %24 = vector.load %arg7[%c0_15, %c0_16] : memref<32x1xf32, #tpu.memory_space<vmem>>, vector<32x1xf32>
    %25 = vector.broadcast %24 : vector<32x1xf32> to vector<32x256xf32>
    %26 = arith.addf %23, %25 : vector<32x256xf32>
    %27 = arith.truncf %26 : vector<32x256xf32> to vector<32x256xbf16>
    %28 = arith.truncf %19 : vector<256x128xf32> to vector<256x128xbf16>
    %cst_17 = arith.constant dense<0.000000e+00> : vector<32x128xf32>
    %29 = tpu.matmul %27, %28, %cst_17 {dimension_numbers = #tpu.dot_dimension_numbers<[1], [0], [0], [1], [0, 0, 1, 1], [], []>} : vector<32x256xbf16>, vector<256x128xbf16>, vector<32x128xf32> -> vector<32x128xf32>
    %30 = tpu.reciprocal %21 {approx = true} : vector<1x128xf32> -> vector<1x128xf32>
    %c0_18 = arith.constant 0 : index
    %c0_19 = arith.constant 0 : index
    %31 = memref.load %arg8[%c0_18, %c0_19] : memref<1x1xf32, #tpu.memory_space<smem>>
    %32 = vector.broadcast %30 : vector<1x128xf32> to vector<32x128xf32>
    %33 = arith.mulf %29, %32 : vector<32x128xf32>
    %34 = vector.broadcast %31 : f32 to vector<32x128xf32>
    %35 = arith.mulf %34, %33 : vector<32x128xf32>
    %36 = arith.addf %35, %1 : vector<32x128xf32>
    %c0_20 = arith.constant 0 : index
    %c0_21 = arith.constant 0 : index
    %c0_22 = arith.constant 0 : index
    %37 = vector.load %arg9[%c0_20, %c0_21, %c0_22] : memref<1x32x128xf32, #tpu.memory_space<vmem>>, vector<1x32x128xf32>
    %38 = vector.shape_cast %37 : vector<1x32x128xf32> to vector<32x128xf32>
    %39 = vector.shape_cast %36 : vector<32x128xf32> to vector<1x32x128xf32>
    tpu.vector_store %arg9[%c0_20, %c0_21, %c0_22], %39 {strides = array<i32>} : memref<1x32x128xf32, #tpu.memory_space<vmem>>, vector<1x32x128xf32>,
    return
  }
  func.func @transform_0(%arg0: i32, %arg1: i32) -> (i32, i32, i32) {
    %c0_i32 = arith.constant 0 : i32
    %c0_i32_0 = arith.constant 0 : i32
    return %arg0, %c0_i32, %arg1 : i32, i32, i32
  }
  func.func @transform_1(%arg0: i32, %arg1: i32) -> (i32, i32, i32) {
    %c0_i32 = arith.constant 0 : i32
    %c0_i32_0 = arith.constant 0 : i32
    %c0_i32_1 = arith.constant 0 : i32
    return %arg0, %c0_i32, %c0_i32_0 : i32, i32, i32
  }
  func.func @transform_2(%arg0: i32, %arg1: i32) -> (i32, i32) {
    %c0_i32 = arith.constant 0 : i32
    %c0_i32_0 = arith.constant 0 : i32
    %c0_i32_1 = arith.constant 0 : i32
    return %c0_i32, %c0_i32_0 : i32, i32
  }
  func.func @transform_3(%arg0: i32, %arg1: i32) -> (i32, i32) {
    %c0_i32 = arith.constant 0 : i32
    %c0_i32_0 = arith.constant 0 : i32
    %c0_i32_1 = arith.constant 0 : i32
    return %c0_i32, %c0_i32_0 : i32, i32
  }
  func.func @transform_4(%arg0: i32, %arg1: i32) -> (i32, i32) {
    %c0_i32 = arith.constant 0 : i32
    %c0_i32_0 = arith.constant 0 : i32
    %c0_i32_1 = arith.constant 0 : i32
    return %c0_i32, %c0_i32_0 : i32, i32
  }
  func.func @transform_5(%arg0: i32, %arg1: i32) -> (i32, i32) {
    %c0_i32 = arith.constant 0 : i32
    %c0_i32_0 = arith.constant 0 : i32
    %c0_i32_1 = arith.constant 0 : i32
    return %c0_i32, %c0_i32_0 : i32, i32
  }
  func.func @transform_6(%arg0: i32, %arg1: i32) -> (i32, i32) {
    %c0_i32 = arith.constant 0 : i32
    %c0_i32_0 = arith.constant 0 : i32
    %c0_i32_1 = arith.constant 0 : i32
    return %c0_i32, %c0_i32_0 : i32, i32
  }
  func.func @transform_7(%arg0: i32, %arg1: i32) -> (i32, i32, i32) {
    %c0_i32 = arith.constant 0 : i32
    %c0_i32_0 = arith.constant 0 : i32
    return %arg0, %c0_i32, %arg1 : i32, i32, i32
  }
}

</mosaic_0001>

<bundles_post_ra>
// kernel: tpu_custom_call.1
= control target key start
LH: loop header
LB: loop body
LE: loop exit
PB: predicated region body
PF: predicated region fallthrough
CT: control target
= control target key end

     0   :  { %s2386_s0 = inlined_call_operand.hbm [shape: f32[2,32,256], index: 0, kind: input, shape index: {}]   ;;  %s2387_s1 = inlined_call_operand.hbm [shape: f32[2,32,256], index: 1, kind: input, shape index: {}]   ;;  %s2388_s2 = inlined_call_operand.vmem [shape: bf16[32,32], index: 2, kind: input, shape index: {}]   ;;  %s2389_s3 = inlined_call_operand.vmem [shape: f32[32,1], index: 3, kind: input, shape index: {}]   ;;  %s2390_s4 = inlined_call_operand.vmem [shape: bf16[32,32], index: 4, kind: input, shape index: {}]   ;;  %s2391_s5 = inlined_call_operand.vmem [shape: f32[32,1], index: 5, kind: input, shape index: {}]   ;;  %s2392_s6 = inlined_call_operand.<no memory space> [shape: f32[1,1], index: 6, kind: input, shape index: {}]   ;;  %s2393_s7 = inlined_call_operand.hbm [shape: f32[2,32,256], index: 7, kind: output, shape index: {}]  }
   0x1   :  { %2405 = sst [smem:[#allocation18_spill]] %s2386_s0 }
   0x2   :  { %2406 = sst [smem:[#allocation19_spill]] %s2393_s7 }
   0x3   :  { %12 = sst [smem:[#allocation2]] %s2392_s6 }
   0x4   :  { %13 = vsyncpa [#allocation4], 0 }
   0x5   :  { %15 = vsyncpa [#allocation4 + $0x1], 0 }
   0x6   :  { %16 = vsyncpa [#allocation7], 0 }
   0x7   :  { %18 = vsyncpa [#allocation7 + $0x1], 0 }
   0x8   :  { %19 = vsyncpa [#allocation5], 0 }
   0x9   :  { %21 = vsyncpa [#allocation5 + $0x1], 0  ;;  %s1802_s26 = smov 0   ;;  %s1804_s27 = smov 0  }
   0xa   :  { %s1806_s28 = smov 0   ;;  %s1808_s29 = smov 0  }
   0xb   :  { %s1810_s30 = smov 0   ;;  %s1812_s8 = smov 0  }
   0xc   :  { %s1814_s9 = smov 0   ;;  %s1816_s6 = smov 0  }
   0xd   :  { %s1818_s10 = smov 0   ;;  %s1820_s11 = smov 0  }
   0xe   :  { %s1822_s12 = smov 0  }
   0xf LB: > { %2407 = sst [smem:[#allocation12_spill]] %s1730_s9  ;;  %s2394_s13 = sadd.s32 4294967295, %s1746_s12   ;;  %s1746_s12 = sphi %s1822_s12, %s27_s12   ;;  %s1742_s11 = sphi %s1820_s11, %s2444_s11   ;;  %s1738_s10 = sphi %s1818_s10, %s2443_s10   ;;  %s1734_s6 = sphi %s1816_s6, %s2442_s6   ;;  %s1730_s9 = sphi %s1814_s9, %s2441_s9   ;;  %s1726_s8 = sphi %s1812_s8, %s2440_s8   ;;  %s1722_s30 = sphi %s1810_s30, %s2439_s30   ;;  %s1718_s29 = sphi %s1808_s29, %s2438_s29   ;;  %s1714_s28 = sphi %s1806_s28, %s2437_s28   ;;  %s1710_s27 = sphi %s1804_s27, %s2436_s27   ;;  %s1706_s26 = sphi %s1802_s26, %s2435_s26  }
  0x10   : > { %2408 = sst [smem:[#allocation13_spill]] %s1734_s6  ;;  %s1241_s14 = sadd.s32 4294967294, %s1746_s12  }
  0x11   : > { %s36_s15 = sadd.s32 1, %s1738_s10  ;;  %s39_s16 = sadd.s32 1, %s1742_s11 }
  0x12   : > { %p37_p0 = scmp.ge.s32.totalorder %s36_s15, 2  ;;  %s48_s17 = sadd.s32 1, %s1726_s8 }
  0x13   : > { %p55_p1 = scmp.ne.s32.totalorder %s1726_s8, %s1722_s30  ;;  %p2401_p2 = scmp.eq.s32.totalorder %s1746_s12, 0 }
  0x14   : > { %s2446_s15 = smov (%p37_p0, %s36_s15), 0  ;;  %s2448_s16 = smov (!%p37_p0, %s39_s16), %s1742_s11 }
  0x15   : > { %2409 = sst [smem:[#allocation14_spill]] %s2446_s15  ;;  %s44_s18 = ssub.s32 %s1738_s10, %s2446_s15 }
  0x16   : > { %p1872_p3 = por %p2401_p2, %p55_p1  ;;  %p41_p4 = scmp.ge.s32.totalorder %s2448_s16, 2 }
  0x17   : > { %p2402_p5 = scmp.ne.s32.totalorder %s1722_s30, %s1718_s29  ;;  %p218_p6 = scmp.eq.s32.totalorder %s2394_s13, 3 }
  0x18   : > { %p224_p7 = scmp.eq.s32.totalorder %s1241_s14, 3  ;;  %s2450_s16 = smov (%p41_p4, %s2448_s16), 0 }
  0x19   : > { %2411 = sst [smem:[#allocation15_spill]] %s2450_s16  ;;  %p1882_p8 = por %p218_p6, %p55_p1 }
  0x1a   : > { %p1889_p9 = por %p224_p7, %p2402_p5  ;;  %s1895_s22 = ssub.s32 %s1742_s11, %s2450_s16 }
  0x1b   : > { %s2412_s20 = scalar_select %p1882_p8, 1, 0 }
  0x1c   : > { %s2414_s21 = scalar_select %p1889_p9, 1, 0 }
  0x1d   : > { %2413 = sst [smem:[#allocation16_spill]] %s2412_s20  ;;  %s45_s23 = sor.u32 %s44_s18, %s1895_s22 }
  0x1e   : > { %2415 = sst [smem:[#allocation17_spill]] %s2414_s21  ;;  %p72_p10 = scmp.eq.s32.totalorder %s1895_s22, 0 }
  0x1f   : > { %p46_p11 = scmp.eq.s32.totalorder %s45_s23, 0  ;;  %p1395_p12 = scmp.lt.s32.totalorder %s1746_s12, 4 }
  0x20   : > { %s259_s24 = sand.u32 1, %s1726_s8   ;;  %s1245_s25 = sshll.u32 %s1742_s11, 3 }
  0x21   : > { %s1903_s14 = scalar_select %p46_p11, %s1726_s8, %s48_s17  }
  0x22   : > { %s1244_s13 = sshll.u32 %s259_s24, 5  ;;  %s268_s15 = sadd.s32 %s1738_s10, %s1245_s25 }
  0x23   : > { %s1246_s7 = sshll.u32 %s268_s15, 7  ;;  %s263_s20 = scalar_lea.vmem [#allocation3], %s1244_s13 }
  0x24   : > { %s271_s21 = sshll.u32 %s263_s20, 4  ;;  %s2416_s0 = sld [smem:[#allocation18_spill]]  ;;  %s272_s21 = int_to_ptr.vmem [resolvable:$true] %s271_s21 }
  0x25   : > { %p1913_p13 = pnand %p1395_p12, %p1872_p3  ;;  %p1250_p0 = scmp.ge.s32.totalorder %s1746_s12, 1 }
  0x26   : > { %s260_s17 = scalar_lea.sflag [#allocation4], %s259_s24  ;;  %s1579_s23 = scalar_lea.vmem %s272_s21, 512 }
  0x27   : > { %p1568_p1 = pneg %p1913_p13  ;;  %p1580_p4 = scmp.ne.s32.totalorder %s272_s21, %s1579_s23 }
  0x28   : > { %s1748_s13 = smov [#allocation3]  }
  0x29   : > { %p1582_p6 = pnand %p1580_p4, %p1568_p1  ;;  %s1584_s15 = sshll.u32 %s1748_s13, 4  ;;  %s1585_s15 = int_to_ptr.vmem [resolvable:$false] %s1584_s15 }
  0x2a   : > { %s270_s16 = scalar_lea.hbm %s2416_s0, %s1246_s7  ;;  %s1586_s7 = scalar_lea.vmem %s1585_s15, 1024 }
  0x2b   : > { %p1583_p7 = pneg %p1582_p6  ;;  %p1587_p11 = scmp.lt.s32.totalorder %s272_s21, %s1585_s15 }
  0x2c   : > { %p1588_p2 = scmp.lt.s32.totalorder %s1586_s7, %s1579_s23 }
  0x2e   : > { %p1589_p5 = por %p1588_p2, %p1587_p11 }
  0x30   : > { %p1590_p3 = pnand %p1589_p5, %p1583_p7 }
  0x32   : > { %1593 = shalt.err (!%p1590_p3)
}
  0x33   : > { %s2403_s9 = smov 256   ;;  %s1750_s6 = smov 128  }
  0x34   : > { %s1751_s19 = smov 8   ;;  %p300_p2 = scmp.lt.s32.totalorder %s1746_s12, 5 }
  0x35   : > { %1387 = dma.hbm_to_vmem [thread:$0]  (!%p1913_p13), %s270_s16, 512, %s272_s21, %s260_s17, %s2403_s9, %s1750_s6, %s1751_s19  }
  0x36   : > { %p1926_p5 = pnand %p1250_p0, %p300_p2  ;;  %s2419_s24 = sadd.s32 4294967295, %s1746_s12  }
  0x37   : > { %p62_p1 = scmp.eq.s32.totalorder %s2419_s24, 0  ;;  %s74_s25 = sadd.s32 1, %s1714_s28 }
  0x38   : > { %s1936_s23 = scalar_select %p72_p10, %s1714_s28, %s74_s25  }
  0x39   : > { %p2420_p4 = scmp.ne.s32.totalorder %s1722_s30, %s1718_s29  ;;  %p81_p7 = scmp.ne.s32.totalorder %s1714_s28, %s1710_s27 }
  0x3a   : > { %p87_p13 = scmp.ne.s32.totalorder %s1710_s27, %s1706_s26  ;;  %s281_s16 = sand.u32 1, %s1714_s28  }
  0x3b   : > { %p1941_p6 = por %p62_p1, %p2420_p4  ;;  %p2422_p11 = scmp.eq.s32.totalorder %s1746_s12, 0 }
  0x3c   : > { %p1952_p3 = por %p87_p13, %p62_p1  ;;  %s1247_s18 = sshll.u32 %s281_s16, 6 }
  0x3d   : > { %p83_p0 = por %p81_p7, %p2422_p11  ;;  %s1283_s17 = sshll.u32 %s1742_s11, 10 }
  0x3e   : > { %s291_s7 = scalar_lea.hbm %s2387_s1, %s1283_s17  ;;  %s285_s6 = scalar_lea.vmem [#allocation6], %s1247_s18 }
  0x3f   : > { %s292_s19 = sshll.u32 %s285_s6, 4  ;;  %p1962_p10 = pnand %p1395_p12, %p83_p0  ;;  %s293_s19 = int_to_ptr.vmem [resolvable:$true] %s292_s19 }
  0x40   : > { %s282_s26 = scalar_lea.sflag [#allocation7], %s281_s16  ;;  %s1607_s25 = scalar_lea.vmem %s293_s19, 1024 }
  0x41   : > { %p1596_p2 = pneg %p1962_p10  ;;  %p1608_p1 = scmp.ne.s32.totalorder %s293_s19, %s1607_s25 }
  0x42   : > { %s1752_s9 = smov [#allocation6]  }
  0x43   : > { %p1610_p4 = pnand %p1608_p1, %p1596_p2  ;;  %s1612_s0 = sshll.u32 %s1752_s9, 4  ;;  %s1613_s0 = int_to_ptr.vmem [resolvable:$false] %s1612_s0 }
  0x44   : > { %s1614_s17 = scalar_lea.vmem %s1613_s0, 2048  ;;  %p1615_p13 = scmp.lt.s32.totalorder %s293_s19, %s1613_s0 }
  0x45   : > { %p1611_p7 = pneg %p1610_p4  ;;  %p1616_p11 = scmp.lt.s32.totalorder %s1614_s17, %s1607_s25 }
  0x47   : > { %p1617_p9 = por %p1616_p11, %p1615_p13 }
  0x49   : > { %p1618_p8 = pnand %p1617_p9, %p1611_p7 }
  0x4b   : > { %1621 = shalt.err (!%p1618_p8)
}
  0x4c   : > { %s1753_s18 = smov 16   ;;  %s2425_s15 = smov 256  }
  0x4d   : > { %1390 = dma.hbm_to_vmem [thread:$0]  (!%p1962_p10), %s291_s7, 1024, %s293_s19, %s282_s26, %s2425_s15, %s2425_s15, %s1753_s18  }
  0x4e   : > { %304 = sbr.rel (%p1926_p5) target bundleno = 890 (0x37a), region = 48  ;;  %s1975_s16 = sand.u32 (!%p1926_p5), 1, %s1722_s30  }
  0x4f   : > { %s1251_s0 = sshll.u32 (!%p1926_p5), %s1975_s16, 5  ;;  %s307_s9 = scalar_lea.sflag (!%p1926_p5), [#allocation4], %s1975_s16 }
  0x50   : > { %s310_s22 = scalar_lea.vmem (!%p1926_p5), [#allocation3], %s1251_s0 }
  0x53   : > { %1693 = dma.done.wait (%p1941_p6), %s307_s9, 512  }
  0x54   : > { %1695 = vsyncadd (%p1941_p6), %s307_s9, 4294966784  ;;  %s315_s20 = sand.u32 1, %s1710_s27  }
  0x55   : > { %s1252_s7 = sshll.u32 %s315_s20, 6  ;;  %s316_s6 = scalar_lea.sflag [#allocation7], %s315_s20 }
  0x56   : > { %s1986_s19 = scalar_lea.vmem [#allocation6], %s1252_s7 }
  0x57   : > { %1697 = dma.done.wait (%p1952_p3), %s316_s6, 1024  }
  0x58   : > { %1699 = vsyncadd (%p1952_p3), %s316_s6, 4294966272  ;;  %v1754_v0 = vmov 0   ;;  %v380_v1 = vld [vmem:[%s2389_s3 + $0x10] sm:$0xff]  ;;  %v378_v2 = vld [vmem:[%s2389_s3] sm:$0xff]  ;;  %vm412_vm0 = vcmask 261120   ;;  %s1096_s7 = sld [smem:[#allocation2]] }
  0x59   : > { %1495 = vset.pattern.permute.xlu1 %v1754_v0  ;;  %1494 = vset.pattern.permute.xlu0 %v1754_v0  ;;  %v1998_v3 = vld [vmem:[%s310_s22 + $0x10] sm:$0xff]  ;;  %v2000_v4 = vld [vmem:[%s310_s22 + $0x18] sm:$0xff]  ;;  %v379_v6 = vld [vmem:[%s2389_s3 + $0x8] sm:$0xff]  ;;  %s2426_s6 = sld [smem:[#allocation13_spill]]  ;;  %s354_s24 = scalar_lea.vmem [#allocation8], %s1251_s0 }
  0x5a   : > { %394 = vperm.xlu0 %1494, %v380_v1   ;;  %384 = vperm.xlu1 %1495, %v378_v2   ;;  %v381_v5 = vld [vmem:[%s2389_s3 + $0x18] sm:$0xff]  ;;  %v369_v7 = vpack.c.bf16 %v2000_v4, %v1998_v3  ;;  %v2010_v8 = vld [vmem:[%s310_s22] sm:$0xff]  ;;  %v2012_v9 = vld [vmem:[%s310_s22 + $0x8] sm:$0xff]  ;;  %s2427_s22 = sld [smem:[#allocation12_spill]]  ;;  %s1129_s25 = sshll.u32 %s354_s24, 4  ;;  %s2318_s25 = int_to_ptr.vmem [resolvable:$true] %s1129_s25 }
  0x5b   : > { %v368_v10 = vpack.c.bf16 %v2012_v9, %v2010_v8  ;;  %v1496_v11 = vld [vmem:[%s2388_s2] sm:$0xff]   ;;  %v1497_v12 = vld [vmem:[%s2388_s2 + $0x8] sm:$0xff]   ;;  %v363_v13 = vld [vmem:[%s1986_s19 + $0x18] sm:$0xff]  ;;  %s2429_s18 = sld [smem:[#allocation19_spill]]  ;;  %s1115_s9 = scalar_lea.sflag [#allocation5], %s1975_s16 }
  0x5c   : > { %1334 = vmatprep.subr.bf16.mxu0 %v369_v7  ;;  %v366_v14 = vld [vmem:[%s1986_s19 + $0x30] sm:$0xff]  ;;  %v365_v15 = vld [vmem:[%s1986_s19 + $0x28] sm:$0xff]  ;;  %1338 = vmatprep.mubr.msk.bf16.mxu0 %vm412_vm0, %v1496_v11  ;;  %v367_v16 = vld [vmem:[%s1986_s19 + $0x38] sm:$0xff]  ;;  %s1622_s20 = scalar_lea.vmem %s2318_s25, 512 }
  0x5d   : > { %1335 = vmatpush3.bf16.msra.mxu0 %v369_v7  ;;  %v364_v17 = vld [vmem:[%s1986_s19 + $0x20] sm:$0xff]  ;;  %v373_v18 = vpack.c.bf16 %v367_v16, %v365_v15  ;;  %v361_v19 = vld [vmem:[%s1986_s19 + $0x8] sm:$0xff]  ;;  %v362_v23 = vld [vmem:[%s1986_s19 + $0x10] sm:$0xff]  ;;  %p1623_p8 = scmp.ne.s32.totalorder %s2318_s25, %s1622_s20 }
  0x5e   : > { %399 = vperm.xlu0 %1494, %v381_v5   ;;  %389 = vperm.xlu1 %1495, %v379_v6   ;;  %v372_v20 = vpack.c.bf16 %v366_v14, %v364_v17  ;;  %v371_v21 = vpack.c.bf16 %v363_v13, %v361_v19  ;;  %v360_v22 = vld [vmem:[%s1986_s19] sm:$0xff]  ;;  %v1499_v26 = vld [vmem:[%s2390_s4 + $0x8] sm:$0xff]   ;;  %v935_v29 = vld [vmem:[%s2391_s5 + $0x10] sm:$0xff]  ;;  %s2428_s19 = sld [smem:[#allocation16_spill]] }
  0x5f   : > { %1336 = vmatprep.subr.bf16.mxu0 %v368_v10  ;;  %v370_v24 = vpack.c.bf16 %v362_v23, %v360_v22  ;;  %v1498_v25 = vld [vmem:[%s2390_s4] sm:$0xff]   ;;  %v934_v28 = vld [vmem:[%s2391_s5 + $0x8] sm:$0xff]  ;;  %v936_v30 = vld [vmem:[%s2391_s5 + $0x18] sm:$0xff]  ;;  %s1279_s26 = sshll.u32 %s2426_s6, 3 }
  0x60   : > { %v933_v27 = vld [vmem:[%s2391_s5] sm:$0xff]  ;;  %s1126_s13 = sadd.s32 %s2427_s22, %s1279_s26 }
  0x61   : > { %1337 = vmatpush3.bf16.msra.mxu0 %v368_v10  ;;  %s1280_s0 = sshll.u32 %s1126_s13, 7 }
  0x62   : > { %985 = vmatprep.subr.bf16.mxu0 %v373_v18  ;;  %s2323_s15 = scalar_lea.hbm %s2429_s18, %s1280_s0 }
  0x64   : > { %1339 = vmatmul.mubr.msk.bf16.vlgmr.msra.gmra.mxu0 %vm412_vm0, %v1497_v12  ;;  %p2430_p9 = scmp.ne.s32.totalorder %s2428_s19, 0 }
  0x65   : > { %986 = vmatpush1.bf16.msra.mxu0 %v372_v20  ;;  %1005 = vmatprep.mubr.bf16.mxu0 %v1754_v0 }
  0x66   : > { %987 = vmatprep.subr.bf16.mxu0 %v371_v21  ;;  %p1624_p12 = pnand %p1623_p8, %p2430_p9 }
  0x68   : > { %p1625_p5 = pneg %p1624_p12 }
  0x69   : > { %988 = vmatpush1.bf16.msra.mxu0 %v370_v24 }
  0x6c   : > { %1276 = vmatmul.mubr.msk.bf16.vlgmr.msra.gmra.mxu0 %vm412_vm0, %v1498_v25 }
  0x6d   : > { %1015 = vmatprep.mubr.bf16.mxu0 %v1754_v0 }
  0x74   : > { %1277 = vmatmul.mubr.msk.bf16.gmra.mxu0 %vm412_vm0, %v1499_v26 }
  0x7c   : > { %468 = vxpose.xlu0.b32.start [1/4] (short) %v360_v22, 128 }
  0x80   : > { %469 = vxpose.xlu0.b32.cont [2/4] (short) %v362_v23, 128 }
  0x84   : > { %470 = vxpose.xlu0.b32.cont [3/4] (short) %v364_v17, 128 }
  0x87   : > { %500 = vxpose.xlu1.b32.start [1/4] (short) %v361_v19, 128 }
  0x88   : > { %471 = vxpose.xlu0.b32.end [4/4] (short) %v366_v14, 128 }
  0x8b   : > { %501 = vxpose.xlu1.b32.cont [2/4] (short) %v363_v13, 128 }
  0x8f   : > { %502 = vxpose.xlu1.b32.cont [3/4] (short) %v365_v15, 128 }
  0x93   : > { %503 = vxpose.xlu1.b32.end [4/4] (short) %v367_v16, 128 }
  0xd5   : > { %v395_v31 = vpop.permute.xlu0 %394  ;;  %v385_v34 = vpop.permute.xlu1 %384 }
  0xd9   : > { %v400_v32 = vpop.permute.xlu0 %399  ;;  %v390_v37 = vpop.permute.xlu1 %389 }
  0xe1   : > { %939 = vperm.xlu0 %1494, %v933_v27   ;;  %944 = vperm.xlu1 %1495, %v934_v28  }
  0xe5   : > { %949 = vperm.xlu0 %1494, %v935_v29   ;;  %954 = vperm.xlu1 %1495, %v936_v30  }
  0xf8   : > { %v484_v33 = vpop.trf.xlu0 }
  0xfc   : > { %v485_v35 = vpop.trf.xlu0 }
  0xfd   : > { %v532_v36 = vpack.c.bf16 %v485_v35, %v484_v33 }
  0xff   : > { %1346 = vmatprep.mubr.msk.bf16.mxu1 %vm412_vm0, %v532_v36 }
 0x100   : > { %v486_v38 = vpop.trf.xlu0 }
 0x103   : > { %v516_v40 = vpop.trf.xlu1 }
 0x104   : > { %v487_v39 = vpop.trf.xlu0 }
 0x105   : > { %v533_v6 = vpack.c.bf16 %v487_v39, %v486_v38 }
 0x107   : > { %v517_v42 = vpop.trf.xlu1 }
 0x108   : > { %v488_v41 = vpop.trf.xlu0  ;;  %v540_v23 = vpack.c.bf16 %v517_v42, %v516_v40 }
 0x10b   : > { %v518_v43 = vpop.trf.xlu1 }
 0x10c   : > { %v489_v44 = vpop.trf.xlu0 }
 0x10d   : > { %v534_v7 = vpack.c.bf16 %v489_v44, %v488_v41 }
 0x10f   : > { %v519_v45 = vpop.trf.xlu1 }
 0x110   : > { %v490_v46 = vpop.trf.xlu0  ;;  %v541_v26 = vpack.c.bf16 %v519_v45, %v518_v43 }
 0x113   : > { %v520_v47 = vpop.trf.xlu1 }
 0x114   : > { %v491_v48 = vpop.trf.xlu0 }
 0x115   : > { %v535_v12 = vpack.c.bf16 %v491_v48, %v490_v46 }
 0x117   : > { %v521_v49 = vpop.trf.xlu1 }
 0x118   : > { %v492_v50 = vpop.trf.xlu0  ;;  %v542_v27 = vpack.c.bf16 %v521_v49, %v520_v47 }
 0x11b   : > { %v2053_v51 = vpop.trf.xlu1 }
 0x11c   : > { %v493_v53 = vpop.trf.xlu0 }
 0x11d   : > { %v536_v13 = vpack.c.bf16 %v493_v53, %v492_v50 }
 0x11f   : > { %v523_v55 = vpop.trf.xlu1 }
 0x120   : > { %v494_v60 = vpop.trf.xlu0 }
 0x123   : > { %v524_v0 = vpop.trf.xlu1 }
 0x124   : > { %v1340_v52 = vpop.f32.mrf.mxu0  ;;  %v495_v2 = vpop.trf.xlu0 }
 0x125   : > { %v462_v57 = vadd.f32 %v1340_v52, %v395_v31  ;;  %v537_v17 = vpack.c.bf16 %v495_v2, %v494_v60  ;;  %v543_v31 = vpack.c.bf16 %v523_v55, %v2053_v51 }
 0x126   : > { %v453_v54 = vpop.f32.mrf.mxu0 }
 0x127   : > { %v454_v61 = vadd.f32 %v453_v54, %v385_v34  ;;  %v525_v5 = vpop.trf.xlu1 }
 0x128   : > { %v1341_v56 = vpop.f32.mrf.mxu0  ;;  %v496_v10 = vpop.trf.xlu0  ;;  %v544_v33 = vpack.c.bf16 %v525_v5, %v524_v0 }
 0x129   : > { %v465_v58 = vadd.f32 %v1341_v56, %v400_v32 }
 0x12a   : > { %v456_v59 = vpop.f32.mrf.mxu0 }
 0x12b   : > { %v457_v62 = vadd.f32 %v456_v59, %v390_v37  ;;  %v549_v63 = vpack.c.bf16 %v465_v58, %v462_v57  ;;  %v526_v11 = vpop.trf.xlu1 }
 0x12c   : > { %v497_v14 = vpop.trf.xlu0  ;;  %v1007_v24 = vpop.f32.mrf.mxu0 }
 0x12d   : > { %v548_v1 = vpack.c.bf16 %v457_v62, %v454_v61  ;;  %1342 = vmatprep.subr.bf16.mxu1 %v549_v63  ;;  %v538_v18 = vpack.c.bf16 %v497_v14, %v496_v10 }
 0x12e   : > { %1343 = vmatpush3.bf16.msra.mxu1 %v549_v63  ;;  %v1009_v28 = vpop.f32.mrf.mxu0 }
 0x12f   : > { %1344 = vmatprep.subr.bf16.mxu1 %v548_v1  ;;  %v527_v15 = vpop.trf.xlu1 }
 0x130   : > { %v498_v16 = vpop.trf.xlu0  ;;  %v1011_v30 = vpop.f32.mrf.mxu0  ;;  %v545_v42 = vpack.c.bf16 %v527_v15, %v526_v11 }
 0x132   : > { %1345 = vmatpush3.bf16.msra.mxu1 %v548_v1  ;;  %v1013_v34 = vpop.f32.mrf.mxu0 }
 0x133   : > { %v528_v19 = vpop.trf.xlu1 }
 0x134   : > { %v499_v20 = vpop.trf.xlu0 }
 0x135   : > { %1347 = vmatmul.mubr.msk.bf16.vlgmr.msra.gmra.mxu1 %vm412_vm0, %v533_v6  ;;  %v539_v22 = vpack.c.bf16 %v499_v20, %v498_v16 }
 0x136   : > { %1350 = vmatprep.mubr.msk.bf16.mxu1 %vm412_vm0, %v534_v7 }
 0x137   : > { %v529_v21 = vpop.trf.xlu1 }
 0x138   : > { %v546_v43 = vpack.c.bf16 %v529_v21, %v528_v19 }
 0x13b   : > { %v530_v25 = vpop.trf.xlu1 }
 0x13d   : > { %1351 = vmatmul.mubr.msk.bf16.gmra.mxu1 %vm412_vm0, %v535_v12 }
 0x13e   : > { %1354 = vmatprep.mubr.msk.bf16.mxu1 %vm412_vm0, %v536_v13 }
 0x13f   : > { %v531_v29 = vpop.trf.xlu1 }
 0x140   : > { %v547_v44 = vpack.c.bf16 %v531_v29, %v530_v25 }
 0x145   : > { %1355 = vmatmul.mubr.msk.bf16.gmra.mxu1 %vm412_vm0, %v537_v17 }
 0x146   : > { %1358 = vmatprep.mubr.msk.bf16.mxu1 %vm412_vm0, %v538_v18 }
 0x14d   : > { %1359 = vmatmul.mubr.msk.bf16.gmra.mxu1 %vm412_vm0, %v539_v22 }
 0x14e   : > { %1362 = vmatprep.mubr.msk.bf16.mxu1 %vm412_vm0, %v540_v23 }
 0x155   : > { %1363 = vmatmul.mubr.msk.bf16.gmra.mxu1 %vm412_vm0, %v541_v26 }
 0x156   : > { %1366 = vmatprep.mubr.msk.bf16.mxu1 %vm412_vm0, %v542_v27 }
 0x15c   : > { %v940_v32 = vpop.permute.xlu0 %939  ;;  %v945_v35 = vpop.permute.xlu1 %944 }
 0x15d   : > { %v2066_v36 = vadd.f32 %v1007_v24, %v940_v32  ;;  %v1010_v37 = vadd.f32 %v1009_v28, %v940_v32  ;;  %v2068_v38 = vadd.f32 %v1011_v30, %v945_v35  ;;  %v1014_v39 = vadd.f32 %v1013_v34, %v945_v35  ;;  %1367 = vmatmul.mubr.msk.bf16.gmra.mxu1 %vm412_vm0, %v543_v31 }
 0x15e   : > { %1370 = vmatprep.mubr.msk.bf16.mxu1 %vm412_vm0, %v544_v33 }
 0x15f   : > { %v1026_v40 = vpack.c.bf16 %v2068_v38, %v2066_v36  ;;  %v1027_v41 = vpack.c.bf16 %v1014_v39, %v1010_v37  ;;  %v1101_v38 = vstv %s1096_s7  ;;  %s1755_s7 = smov [#allocation8]  }
 0x160   : > { %s1626_s6 = sshll.u32 %s1755_s7, 4  ;;  %s1627_s6 = int_to_ptr.vmem [resolvable:$false] %s1626_s6 }
 0x161   : > { %1078 = vmatprep.mubr.bf16.mxu0 %v1027_v41  ;;  %s1628_s22 = scalar_lea.vmem %s1627_s6, 1024  ;;  %p1629_p6 = scmp.lt.s32.totalorder %s2318_s25, %s1627_s6 }
 0x162   : > { %p1630_p0 = scmp.lt.s32.totalorder %s1628_s22, %s1622_s20 }
 0x164   : > { %p1631_p3 = por %p1630_p0, %p1629_p6 }
 0x165   : > { %1371 = vmatmul.mubr.msk.bf16.gmra.mxu1 %vm412_vm0, %v545_v42 }
 0x166   : > { %1374 = vmatprep.mubr.msk.bf16.mxu1 %vm412_vm0, %v546_v43  ;;  %p1632_p10 = pnand %p1631_p3, %p1625_p5 }
 0x16d   : > { %1375 = vmatmul.mubr.msk.bf16.gmra.mxu1 %vm412_vm0, %v547_v44 }
 0x1f5   : > { %v2077_v45 = vpop.f32.mrf.mxu1 }
 0x1f7   : > { %v2079_v46 = vpop.f32.mrf.mxu1 }
 0x1f9   : > { %v2081_v47 = vpop.f32.mrf.mxu1 }
 0x1fb   : > { %v2083_v48 = vpop.f32.mrf.mxu1 }
 0x1fd   : > { %v2085_v49 = vpop.f32.mrf.mxu1 }
 0x1fe   : > { %v761_v12 = vmax.f32 %v2077_v45, %v2085_v49 }
 0x1ff   : > { %v2087_v50 = vpop.f32.mrf.mxu1 }
 0x200   : > { %v759_v13 = vmax.f32 %v2079_v46, %v2087_v50 }
 0x201   : > { %v2089_v51 = vpop.f32.mrf.mxu1 }
 0x202   : > { %v762_v10 = vmax.f32 %v2081_v47, %v2089_v51 }
 0x203   : > { %v2091_v52 = vpop.f32.mrf.mxu1 }
 0x204   : > { %v760_v14 = vmax.f32 %v2083_v48, %v2091_v52 }
 0x205   : > { %v2093_v53 = vpop.f32.mrf.mxu1 }
 0x206   : > { %v765_v17 = vmax.f32 %v761_v12, %v2093_v53 }
 0x207   : > { %v2095_v54 = vpop.f32.mrf.mxu1 }
 0x208   : > { %v763_v18 = vmax.f32 %v759_v13, %v2095_v54 }
 0x209   : > { %v2097_v55 = vpop.f32.mrf.mxu1 }
 0x20a   : > { %v766_v15 = vmax.f32 %v762_v10, %v2097_v55 }
 0x20b   : > { %v2099_v56 = vpop.f32.mrf.mxu1 }
 0x20c   : > { %v764_v19 = vmax.f32 %v760_v14, %v2099_v56 }
 0x20d   : > { %v2101_v57 = vpop.f32.mrf.mxu1 }
 0x20e   : > { %v769_v22 = vmax.f32 %v765_v17, %v2101_v57 }
 0x20f   : > { %v2103_v58 = vpop.f32.mrf.mxu1 }
 0x210   : > { %v767_v23 = vmax.f32 %v763_v18, %v2103_v58 }
 0x211   : > { %v2105_v59 = vpop.f32.mrf.mxu1 }
 0x212   : > { %v770_v20 = vmax.f32 %v766_v15, %v2105_v59 }
 0x213   : > { %v2107_v60 = vpop.f32.mrf.mxu1 }
 0x214   : > { %v768_v24 = vmax.f32 %v764_v19, %v2107_v60 }
 0x215   : > { %v2109_v61 = vpop.f32.mrf.mxu1 }
 0x216   : > { %v773_v27 = vmax.f32 %v769_v22, %v2109_v61 }
 0x217   : > { %v2111_v62 = vpop.f32.mrf.mxu1 }
 0x218   : > { %v771_v28 = vmax.f32 %v767_v23, %v2111_v62 }
 0x219   : > { %v2113_v63 = vpop.f32.mrf.mxu1 }
 0x21a   : > { %v774_v25 = vmax.f32 %v770_v20, %v2113_v63 }
 0x21b   : > { %v2115_v0 = vpop.f32.mrf.mxu1 }
 0x21c   : > { %v772_v29 = vmax.f32 %v768_v24, %v2115_v0 }
 0x21d   : > { %v2117_v1 = vpop.f32.mrf.mxu1 }
 0x21e   : > { %v777_v32 = vmax.f32 %v773_v27, %v2117_v1 }
 0x21f   : > { %v2119_v2 = vpop.f32.mrf.mxu1 }
 0x220   : > { %v775_v33 = vmax.f32 %v771_v28, %v2119_v2 }
 0x221   : > { %v2121_v5 = vpop.f32.mrf.mxu1 }
 0x222   : > { %v778_v30 = vmax.f32 %v774_v25, %v2121_v5 }
 0x223   : > { %v2123_v6 = vpop.f32.mrf.mxu1 }
 0x224   : > { %v776_v34 = vmax.f32 %v772_v29, %v2123_v6 }
 0x225   : > { %v2125_v7 = vpop.f32.mrf.mxu1 }
 0x226   : > { %v781_v39 = vmax.f32 %v777_v32, %v2125_v7 }
 0x227   : > { %v2129_v11 = vpop.f32.mrf.mxu1 }
 0x228   : > { %v779_v41 = vmax.f32 %v775_v33, %v2129_v11 }
 0x229   : > { %v2138_v16 = vpop.f32.mrf.mxu1 }
 0x22a   : > { %v782_v35 = vmax.f32 %v778_v30, %v2138_v16 }
 0x22b   : > { %v2144_v21 = vpop.f32.mrf.mxu1 }
 0x22c   : > { %v780_v42 = vmax.f32 %v776_v34, %v2144_v21 }
 0x22d   : > { %v2150_v26 = vpop.f32.mrf.mxu1 }
 0x22e   : > { %v785_v10 = vmax.f32 %v781_v39, %v2150_v26 }
 0x22f   : > { %v2156_v31 = vpop.f32.mrf.mxu1 }
 0x230   : > { %v783_v12 = vmax.f32 %v779_v41, %v2156_v31 }
 0x231   : > { %v2162_v37 = vpop.f32.mrf.mxu1 }
 0x232   : > { %v786_v43 = vmax.f32 %v782_v35, %v2162_v37 }
 0x233   : > { %v2168_v44 = vpop.f32.mrf.mxu1 }
 0x234   : > { %v784_v13 = vmax.f32 %v780_v42, %v2168_v44  ;;  %v788_v14 = vmax.f32 %v785_v10, %v786_v43 }
 0x236   : > { %v787_v15 = vmax.f32 %v783_v12, %v784_v13 }
 0x238   : > { %v789_v17 = vmax.f32 %v787_v15, %v788_v14 }
 0x23a   : > { %v790_v18 = vrot.slane %v789_v17, 4 }
 0x23c   : > { %v791_v19 = vmax.f32 %v789_v17, %v790_v18 }
 0x23e   : > { %v792_v20 = vrot.slane %v791_v19, 2 }
 0x240   : > { %v793_v22 = vmax.f32 %v791_v19, %v792_v20 }
 0x242   : > { %v794_v23 = vrot.slane %v793_v22, 1 }
 0x244   : > { %v2173_v24 = vmax.f32 %v793_v22, %v794_v23 }
 0x246   : > { %v796_v25 = vsub.f32 %v2079_v46, %v2173_v24  ;;  %v797_v27 = vsub.f32 %v2083_v48, %v2173_v24  ;;  %v798_v28 = vsub.f32 %v2077_v45, %v2173_v24  ;;  %v799_v29 = vsub.f32 %v2081_v47, %v2173_v24 }
 0x247   : > { %v800_v30 = vsub.f32 %v2087_v50, %v2173_v24  ;;  %v801_v34 = vsub.f32 %v2091_v52, %v2173_v24  ;;  %v804_v46 = vsub.f32 %v2095_v54, %v2173_v24  ;;  %v805_v48 = vsub.f32 %v2099_v56, %v2173_v24 }
 0x248   : > { %v828_v32 = vmul.f32 1.442695, %v796_v25  ;;  %v830_v33 = vmul.f32 1.442695, %v797_v27  ;;  %v832_v35 = vmul.f32 1.442695, %v798_v28  ;;  %v802_v47 = vsub.f32 %v2085_v49, %v2173_v24 }
 0x249   : > { %v834_v45 = vmul.f32 1.442695, %v799_v29  ;;  %v836_v39 = vmul.f32 1.442695, %v800_v30  ;;  %v838_v50 = vmul.f32 1.442695, %v801_v34  ;;  %v803_v52 = vsub.f32 %v2089_v51, %v2173_v24 }
 0x24a   : > { %1500 = vpow2.f32 %v828_v32  ;;  %v844_v41 = vmul.f32 1.442695, %v804_v46  ;;  %v846_v42 = vmul.f32 1.442695, %v805_v48  ;;  %v806_v54 = vsub.f32 %v2093_v53, %v2173_v24 }
 0x24b   : > { %1502 = vpow2.f32 %v830_v33  ;;  %v840_v56 = vmul.f32 1.442695, %v802_v47  ;;  %v812_v43 = vsub.f32 %v2111_v62, %v2173_v24  ;;  %v813_v49 = vsub.f32 %v2115_v0, %v2173_v24 }
 0x24c   : > { %1504 = vpow2.f32 %v832_v35  ;;  %v842_v10 = vmul.f32 1.442695, %v803_v52  ;;  %v814_v51 = vsub.f32 %v2109_v61, %v2173_v24  ;;  %v815_v12 = vsub.f32 %v2113_v63, %v2173_v24 }
 0x24d   : > { %1506 = vpow2.f32 %v834_v45  ;;  %v848_v13 = vmul.f32 1.442695, %v806_v54  ;;  %v860_v53 = vmul.f32 1.442695, %v812_v43  ;;  %v807_v62 = vsub.f32 %v2097_v55, %v2173_v24 }
 0x24e   : > { %1508 = vpow2.f32 %v836_v39  ;;  %v862_v15 = vmul.f32 1.442695, %v813_v49  ;;  %v864_v0 = vmul.f32 1.442695, %v814_v51  ;;  %v808_v18 = vsub.f32 %v2103_v58, %v2173_v24 }
 0x24f   : > { %1510 = vpow2.f32 %v838_v50  ;;  %v866_v61 = vmul.f32 1.442695, %v815_v12  ;;  %v809_v20 = vsub.f32 %v2107_v60, %v2173_v24  ;;  %v850_v55 = vmul.f32 1.442695, %v807_v62 }
 0x250   : > { %1512 = vpow2.f32 %v844_v41  ;;  %v810_v58 = vsub.f32 %v2101_v57, %v2173_v24  ;;  %v811_v27 = vsub.f32 %v2105_v59, %v2173_v24  ;;  %v852_v28 = vmul.f32 1.442695, %v808_v18 }
 0x251   : > { %1514 = vpow2.f32 %v846_v42  ;;  %v824_v30 = vsub.f32 %v2156_v31, %v2173_v24  ;;  %v825_v57 = vsub.f32 %v2168_v44, %v2173_v24  ;;  %v854_v33 = vmul.f32 1.442695, %v809_v20 }
 0x252   : > { %1516 = vpow2.f32 %v840_v56  ;;  %v826_v59 = vsub.f32 %v2150_v26, %v2173_v24  ;;  %v827_v46 = vsub.f32 %v2162_v37, %v2173_v24  ;;  %v856_v48 = vmul.f32 1.442695, %v810_v58 }
 0x253   : > { %1518 = vpow2.f32 %v842_v10  ;;  %v858_v31 = vmul.f32 1.442695, %v811_v27  ;;  %v884_v47 = vmul.f32 1.442695, %v824_v30  ;;  %v886_v50 = vmul.f32 1.442695, %v825_v57 }
 0x254   : > { %1520 = vpow2.f32 %v848_v13  ;;  %v822_v26 = vsub.f32 %v2125_v7, %v2173_v24  ;;  %v888_v37 = vmul.f32 1.442695, %v826_v59  ;;  %v823_v42 = vsub.f32 %v2138_v16, %v2173_v24 }
 0x255   : > { %1522 = vpow2.f32 %v860_v53  ;;  %v890_v54 = vmul.f32 1.442695, %v827_v46  ;;  %v816_v10 = vsub.f32 %v2119_v2, %v2173_v24  ;;  %v820_v16 = vsub.f32 %v2129_v11, %v2173_v24 }
 0x256   : > { %1524 = vpow2.f32 %v862_v15  ;;  %v821_v12 = vsub.f32 %v2144_v21, %v2173_v24  ;;  %v880_v13 = vmul.f32 1.442695, %v822_v26  ;;  %v882_v62 = vmul.f32 1.442695, %v823_v42 }
 0x257   : > { %v2205_v14 = vpop.eup %1500  ;;  %1526 = vpow2.f32 %v864_v0  ;;  %v817_v18 = vsub.f32 %v2123_v6, %v2173_v24  ;;  %v868_v11 = vmul.f32 1.442695, %v816_v10  ;;  %v818_v20 = vsub.f32 %v2117_v1, %v2173_v24 }
 0x258   : > { %v2209_v17 = vpop.eup %1502  ;;  %1528 = vpow2.f32 %v866_v61  ;;  %v878_v58 = vmul.f32 1.442695, %v821_v12 }
 0x259   : > { %v892_v63 = vadd.f32 %v2209_v17, %v2205_v14  ;;  %v2215_v19 = vpop.eup %1504  ;;  %1530 = vpow2.f32 %v850_v55  ;;  %v876_v55 = vmul.f32 1.442695, %v820_v16  ;;  %v870_v6 = vmul.f32 1.442695, %v817_v18 }
 0x25a   : > { %v2220_v23 = vpop.eup %1506  ;;  %1532 = vpow2.f32 %v852_v28  ;;  %v872_v57 = vmul.f32 1.442695, %v818_v20 }
 0x25b   : > { %v893_v22 = vadd.f32 %v2215_v19, %v892_v63  ;;  %v2224_v25 = vpop.eup %1508  ;;  %1534 = vpow2.f32 %v854_v33 }
 0x25c   : > { %v2229_v60 = vpop.eup %1510  ;;  %1536 = vpow2.f32 %v856_v48 }
 0x25d   : > { %v894_v29 = vadd.f32 %v2220_v23, %v893_v22  ;;  %v2233_v32 = vpop.eup %1512  ;;  %1538 = vpow2.f32 %v858_v31  ;;  %v819_v22 = vsub.f32 %v2121_v5, %v2173_v24 }
 0x25e   : > { %v2238_v35 = vpop.eup %1514  ;;  %1540 = vpow2.f32 %v884_v47 }
 0x25f   : > { %v895_v34 = vadd.f32 %v2224_v25, %v894_v29  ;;  %v1034_v44 = vpack.c.bf16 %v2238_v35, %v2233_v32  ;;  %v2247_v39 = vpop.eup %1516  ;;  %1542 = vpow2.f32 %v886_v50 }
 0x260   : > { %v2250_v52 = vpop.eup %1518  ;;  %1544 = vpow2.f32 %v888_v37 }
 0x261   : > { %v896_v45 = vadd.f32 %v2229_v60, %v895_v34  ;;  %v2257_v43 = vpop.eup %1520  ;;  %1546 = vpow2.f32 %v890_v54  ;;  %v874_v34 = vmul.f32 1.442695, %v819_v22 }
 0x262   : > { %v2259_v49 = vpop.eup %1522  ;;  %1548 = vpow2.f32 %v880_v13 }
 0x263   : > { %v897_v41 = vadd.f32 %v2247_v39, %v896_v45  ;;  %v2264_v51 = vpop.eup %1524  ;;  %1550 = vpow2.f32 %v882_v62 }
 0x264   : > { %v2270_v53 = vpop.eup %1526  ;;  %v1038_v2 = vpack.c.bf16 %v2264_v51, %v2259_v49  ;;  %1552 = vpow2.f32 %v868_v11 }
 0x265   : > { %v898_v56 = vadd.f32 %v2250_v52, %v897_v41  ;;  %v2275_v0 = vpop.eup %1528  ;;  %1554 = vpow2.f32 %v876_v55 }
 0x266   : > { %v1039_v21 = vpack.c.bf16 %v2275_v0, %v2270_v53  ;;  %v1531_v63 = vpop.eup %1530  ;;  %1556 = vpow2.f32 %v878_v58 }
 0x267   : > { %v899_v7 = vadd.f32 %v2233_v32, %v898_v56  ;;  %v1533_v28 = vpop.eup %1532  ;;  %1558 = vpow2.f32 %v870_v6  ;;  %v1035_v11 = vpack.c.bf16 %v1531_v63, %v2257_v43 }
 0x268   : > { %v1535_v30 = vpop.eup %1534  ;;  %1560 = vpow2.f32 %v872_v57 }
 0x269   : > { %v900_v15 = vadd.f32 %v2238_v35, %v899_v7  ;;  %v1537_v33 = vpop.eup %1536  ;;  %1562 = vpow2.f32 %v874_v34  ;;  %v1036_v7 = vpack.c.bf16 %v1535_v30, %v1533_v28  ;;  %v1031_v35 = vpack.c.bf16 %v2220_v23, %v2215_v19 }
 0x26a   : > { %v1539_v1 = vpop.eup %1538 }
 0x26b   : > { %v901_v61 = vadd.f32 %v2257_v43, %v900_v15  ;;  %v1541_v46 = vpop.eup %1540  ;;  %v1037_v47 = vpack.c.bf16 %v1539_v1, %v1537_v33  ;;  %v1033_v43 = vpack.c.bf16 %v2250_v52, %v2247_v39  ;;  %v950_v39 = vpop.permute.xlu0 %949 }
 0x26c   : > { %v1543_v31 = vpop.eup %1542 }
 0x26d   : > { %v902_v27 = vadd.f32 %v1531_v63, %v901_v61  ;;  %v1545_v5 = vpop.eup %1544  ;;  %v1044_v42 = vpack.c.bf16 %v1543_v31, %v1541_v46 }
 0x26e   : > { %v1547_v45 = vpop.eup %1546 }
 0x26f   : > { %v903_v29 = vadd.f32 %v1533_v28, %v902_v27  ;;  %v1045_v41 = vpack.c.bf16 %v1547_v45, %v1545_v5  ;;  %v1549_v26 = vpop.eup %1548  ;;  %v1017_v27 = vpop.f32.mrf.mxu0 }
 0x270   : > { %v1551_v54 = vpop.eup %1550  ;;  %v1018_v23 = vadd.f32 %v1017_v27, %v950_v39 }
 0x271   : > { %v904_v59 = vadd.f32 %v1535_v30, %v903_v29  ;;  %1306 = vmatprep.subr.bf16.mxu0 %v1045_v41  ;;  %v1553_v10 = vpop.eup %1552  ;;  %v1043_v13 = vpack.c.bf16 %v1551_v54, %v1549_v26  ;;  %v1019_v30 = vpop.f32.mrf.mxu0 }
 0x272   : > { %1307 = vmatpush3.bf16.msra.mxu0 %v1037_v47  ;;  %v1555_v16 = vpop.eup %1554 }
 0x273   : > { %v905_v48 = vadd.f32 %v1537_v33, %v904_v59  ;;  %1308 = vmatprep.subr.bf16.mxu0 %v1044_v42  ;;  %v1557_v62 = vpop.eup %1556  ;;  %v1021_v34 = vpop.f32.mrf.mxu0  ;;  %v1032_v59 = vpack.c.bf16 %v2229_v60, %v2224_v25  ;;  %v1020_v25 = vadd.f32 %v1019_v30, %v950_v39 }
 0x274   : > { %v1559_v18 = vpop.eup %1558  ;;  %v1042_v55 = vpack.c.bf16 %v1557_v62, %v1555_v16 }
 0x275   : > { %v906_v24 = vadd.f32 %v1539_v1, %v905_v48  ;;  %v1561_v61 = vpop.eup %1560  ;;  %v1040_v57 = vpack.c.bf16 %v1559_v18, %v1553_v10  ;;  %v1023_v32 = vpop.f32.mrf.mxu0 }
 0x276   : > { %1309 = vmatpush3.bf16.msra.mxu0 %v1036_v7  ;;  %v1563_v22 = vpop.eup %1562 }
 0x277   : > { %v907_v50 = vadd.f32 %v2259_v49, %v906_v24  ;;  %1310 = vmatprep.subr.bf16.mxu0 %v1043_v13  ;;  %v1041_v6 = vpack.c.bf16 %v1563_v22, %v1561_v61 }
 0x279   : > { %v908_v37 = vadd.f32 %v2264_v51, %v907_v50 }
 0x27a   : > { %1311 = vmatpush3.bf16.msra.mxu0 %v1035_v11 }
 0x27b   : > { %v909_v56 = vadd.f32 %v2270_v53, %v908_v37  ;;  %1312 = vmatprep.subr.bf16.mxu0 %v1042_v55 }
 0x27d   : > { %v910_v12 = vadd.f32 %v2275_v0, %v909_v56 }
 0x27e   : > { %1313 = vmatpush3.bf16.msra.mxu0 %v1034_v44  ;;  %v955_v44 = vpop.permute.xlu1 %954 }
 0x27f   : > { %v911_v15 = vadd.f32 %v1553_v10, %v910_v12  ;;  %1314 = vmatprep.subr.bf16.mxu0 %v1041_v6  ;;  %v1024_v60 = vadd.f32 %v1023_v32, %v955_v44  ;;  %v1022_v19 = vadd.f32 %v1021_v34, %v955_v44 }
 0x281   : > { %v912_v20 = vadd.f32 %v1559_v18, %v911_v15  ;;  %v1029_v0 = vpack.c.bf16 %v1024_v60, %v1020_v25 }
 0x282   : > { %1315 = vmatpush3.bf16.msra.mxu0 %v1033_v43 }
 0x283   : > { %v913_v58 = vadd.f32 %v1561_v61, %v912_v20  ;;  %1316 = vmatprep.subr.bf16.mxu0 %v1040_v57 }
 0x285   : > { %v914_v28 = vadd.f32 %v1563_v22, %v913_v58 }
 0x286   : > { %1317 = vmatpush3.bf16.msra.mxu0 %v1032_v59 }
 0x287   : > { %v915_v29 = vadd.f32 %v1555_v16, %v914_v28  ;;  %1318 = vmatprep.subr.bf16.mxu0 %v1039_v21  ;;  %v1028_v21 = vpack.c.bf16 %v1022_v19, %v1018_v23 }
 0x289   : > { %v916_v63 = vadd.f32 %v1557_v62, %v915_v29 }
 0x28a   : > { %1319 = vmatpush3.bf16.msra.mxu0 %v1031_v35 }
 0x28b   : > { %v917_v33 = vadd.f32 %v1549_v26, %v916_v63  ;;  %1320 = vmatprep.subr.bf16.mxu0 %v1038_v2 }
 0x28d   : > { %v918_v1 = vadd.f32 %v1551_v54, %v917_v33 }
 0x28f   : > { %v919_v48 = vadd.f32 %v1541_v46, %v918_v1  ;;  %v1030_v46 = vpack.c.bf16 %v2209_v17, %v2205_v14 }
 0x291   : > { %v920_v52 = vadd.f32 %v1543_v31, %v919_v48  ;;  %1321 = vmatpush3.bf16.msra.mxu0 %v1030_v46 }
 0x293   : > { %v921_v24 = vadd.f32 %v1545_v5, %v920_v52 }
 0x294   : > { %1079 = vmatmul.mubr.bf16.vlgmr.msra.gmra.mxu0 %v1026_v40 }
 0x295   : > { %v922_v53 = vadd.f32 %v1547_v45, %v921_v24  ;;  %1086 = vmatprep.mubr.bf16.mxu0 %v1029_v0 }
 0x297   : > { %v923_v31 = vrot.slane %v922_v53, 4 }
 0x299   : > { %v924_v49 = vadd.f32 %v923_v31, %v922_v53 }
 0x29b   : > { %v925_v51 = vrot.slane %v924_v49, 2 }
 0x29c   : > { %1087 = vmatmul.mubr.bf16.gmra.mxu0 %v1028_v21 }
 0x29d   : > { %v926_v2 = vadd.f32 %v925_v51, %v924_v49 }
 0x29f   : > { %v927_v5 = vrot.slane %v926_v2, 1 }
 0x2a1   : > { %v928_v47 = vadd.f32 %v927_v5, %v926_v2 }
 0x2a3   : > { %1564 = vrcp.f32 %v928_v47 }
 0x2b0   : > { %v1565_v36 = vpop.eup %1564 }
 0x354   : > { %v1322_v14 = vpop.f32.mrf.mxu0 }
 0x356   : > { %v1323_v17 = vpop.f32.mrf.mxu0 }
 0x357   : > { %v1324_v45 = vadd.f32 %v1323_v17, %v1322_v14 }
 0x358   : > { %v1325_v40 = vpop.f32.mrf.mxu0 }
 0x359   : > { %v1097_v50 = vmul.f32 %v1565_v36, %v1324_v45 }
 0x35a   : > { %v1326_v41 = vpop.f32.mrf.mxu0 }
 0x35b   : > { %v1102_v26 = vmul.f32 %v1101_v38, %v1097_v50  ;;  %v1327_v37 = vadd.f32 %v1326_v41, %v1325_v40 }
 0x35c   : > { %v1328_v42 = vpop.f32.mrf.mxu0 }
 0x35d   : > { %v1106_v54 = vadd.f32 %v1102_v26, %v2010_v8  ;;  %v1098_v56 = vmul.f32 %v1565_v36, %v1327_v37 }
 0x35e   : > { %v1329_v10 = vpop.f32.mrf.mxu0 }
 0x35f   : > { %1110 = vst [vmem:[%s354_s24] sm:$0xff] %v1106_v54  ;;  %v1103_v7 = vmul.f32 %v1101_v38, %v1098_v56  ;;  %v1330_v16 = vadd.f32 %v1329_v10, %v1328_v42 }
 0x360   : > { %v1331_v12 = vpop.f32.mrf.mxu0 }
 0x361   : > { %v1107_v13 = vadd.f32 %v1103_v7, %v2012_v9  ;;  %v1099_v62 = vmul.f32 %v1565_v36, %v1330_v16 }
 0x362   : > { %v1332_v15 = vpop.f32.mrf.mxu0 }
 0x363   : > { %1111 = vst [vmem:[%s354_s24 + $0x8] sm:$0xff] %v1107_v13  ;;  %v1104_v18 = vmul.f32 %v1101_v38, %v1099_v62  ;;  %v1333_v11 = vadd.f32 %v1332_v15, %v1331_v12 }
 0x365   : > { %v1108_v8 = vadd.f32 %v1104_v18, %v1998_v3  ;;  %v1100_v61 = vmul.f32 %v1565_v36, %v1333_v11 }
 0x367   : > { %1112 = vst [vmem:[%s354_s24 + $0x10] sm:$0xff] %v1108_v8  ;;  %v1105_v9 = vmul.f32 %v1101_v38, %v1100_v61 }
 0x369   : > { %v1109_v20 = vadd.f32 %v1105_v9, %v2000_v4 }
 0x36b   : > { %1113 = vst [vmem:[%s354_s24 + $0x18] sm:$0xff] %v1109_v20 }
 0x36c   : > { %1635 = shalt.err (!%p1632_p10)
}
 0x36d   : > { %s1636_s24 = scalar_lea.hbm %s2323_s15, 512  ;;  %s1640_s0 = scalar_lea.hbm %s2429_s18, 2048 }
 0x36e   : > { %p1637_p2 = scmp.ne.s32.totalorder %s2323_s15, %s1636_s24  ;;  %p1641_p7 = scmp.lt.s32.totalorder %s2323_s15, %s2429_s18 }
 0x36f   : > { %p1642_p13 = scmp.lt.s32.totalorder %s1640_s0, %s1636_s24 }
 0x370   : > { %p1638_p1 = pnand %p1637_p2, %p2430_p9 }
 0x371   : > { %p1643_p11 = por %p1642_p13, %p1641_p7 }
 0x372   : > { %p1639_p4 = pneg %p1638_p1 }
 0x374   : > { %p1644_p8 = pnand %p1643_p11, %p1639_p4 }
 0x376   : > { %1647 = shalt.err (!%p1644_p8)
}
 0x377   : > { %s1756_s20 = smov 128   ;;  %s1757_s7 = smov 256  }
 0x378   : > { %s1758_s6 = smov 8  }
 0x379   : > { %1382 = dma.vmem_to_hbm [thread:$0]  (%p2430_p9), %s2318_s25, 512, %s2323_s15, %s1115_s9, %s1756_s20, %s1757_s7, %s1758_s6  }
 0x37a PF: > { %s2431_s22 = sld [smem:[#allocation17_spill]]  ;;  %p1396_p12 = scmp.ge.s32.totalorder %s1746_s12, 2 }
 0x37b   : > { %s1144_s26 = sand.u32 1, %s1718_s29  }
 0x37c   : > { %s1145_s24 = scalar_lea.sflag [#allocation5], %s1144_s26 }
 0x380   : > { %p2432_p5 = scmp.ne.s32.totalorder %s2431_s22, 0 }
 0x382   : > { %p1392_p6 = pnand %p1396_p12, %p2432_p5 }
 0x384   : > { %p1393_p0 = pneg %p1392_p6 }
 0x386   : > { %1701 = dma.done.wait (%p1393_p0), %s1145_s24, 512  }
 0x387   : > { %1703 = vsyncadd (%p1393_p0), %s1145_s24, 4294966784  ;;  %s27_s12 = sadd.s32 1, %s1746_s12   ;;  %s2433_s16 = sld [smem:[#allocation14_spill]] }
 0x388   : > { %p24_p3 = scmp.ge.s32.totalorder %s27_s12, 6   ;;  %s2434_s19 = sld [smem:[#allocation15_spill]] }
 0x389   : > { %s2435_s26 = smov %s1710_s27  ;;  %s2436_s27 = smov %s1714_s28 }
 0x38a   : > { %s2437_s28 = smov %s1936_s23  ;;  %s2438_s29 = smov %s1722_s30 }
 0x38b   : > { %s2439_s30 = smov %s1726_s8  ;;  %s2440_s8 = smov %s1903_s14 }
 0x38c   : > { %s2441_s9 = smov %s1738_s10  ;;  %s2442_s6 = smov %s1742_s11 }
 0x38d   : > { %s2443_s10 = smov %s2433_s16  ;;  %26 = sbr.rel (!%p24_p3) target bundleno = 15 (0xf), region = 106 }
 0x38e   : > { %s2444_s11 = smov %s2434_s19 }
 0x392   :  { %1150 = vsyncpa [#allocation4], 1 }
 0x393   :  { %1152 = vsyncpa [#allocation4 + $0x1], 1 }
 0x394   :  { %1153 = vsyncpa [#allocation7], 1 }
 0x395   :  { %1155 = vsyncpa [#allocation7 + $0x1], 1 }
 0x396   :  { %1156 = vsyncpa [#allocation5], 1 }
 0x397   :  { %1158 = vsyncpa [#allocation5 + $0x1], 1 }

</bundles_post_ra>
